<compile_context>
chip_gen: v7x
topology: tpu7x:2x2x1
jax: 0.10.0
libtpu: 0.0.40
codegen_flags: <defaults>
</compile_context>

<pallas_src>
import jax
import jax.numpy as jnp
from jax import lax
from jax.experimental import pallas as pl
from jax.experimental.pallas import tpu as pltpu


def make_down_conv_kernel(img_w, bblk):
    # Tap offsets into the flattened H*W spatial axis; tap index = kh*3 + kw.
    offsets = [kh * img_w + kw for kh in range(3) for kw in range(3)]

    def kernel(x_ref, w_ref, scale_ref, bias_ref, o_ref, xpad_ref, xsh_ref):
        # x_ref:     (Bblk, Cin, H*W)   f32  channels on sublanes, spatial on lanes
        # w_ref:     (Cout, 9*Cin)      bf16 columns ordered [tap*Cin + ci], tap = kh*3+kw
        # scale_ref: (Cout, 1)          f32  folded BN scale
        # bias_ref:  (Cout, 1)          f32  folded BN bias (includes conv bias)
        # o_ref:     (Bblk, Cout, H*W)  f32  (columns past the valid window hold finite
        #                                     garbage; the wrapper slices them off)
        # xpad_ref:  (Cin, H*W + pad)   f32  scratch: zero right-padded image
        # xsh_ref:   (9*Cin, Bblk*H*W)  bf16 scratch: im2col matrix for the whole block
        cin = x_ref.shape[1]
        hw = x_ref.shape[2]
        hwp = xpad_ref.shape[1]

        # Zero the pad region once; every shifted window then stays in bounds and any
        # out-of-row tail values are finite zeros.
        xpad_ref[:, hw:] = jnp.zeros((cin, hwp - hw), jnp.float32)

        # im2col for all Bblk images: row (tap*Cin + ci), cols [b*HW, (b+1)*HW) is
        # image b's channel ci shifted left by offsets[tap].  Cast to bf16 per tap
        # slice (safe w.r.t. Cin=4 row packing) so the MXU sees bf16 directly.
        for b in range(bblk):
            xpad_ref[:, :hw] = x_ref[b]
            for tap, off in enumerate(offsets):
                xsh_ref[tap * cin:(tap + 1) * cin, b * hw:(b + 1) * hw] = (
                    xpad_ref[:, off:off + hw].astype(jnp.bfloat16))

        # Single K = 9*Cin MXU matmul over the whole image block, f32 accumulation.
        conv_full = jnp.dot(w_ref[...], xsh_ref[...],
                            preferred_element_type=jnp.float32)       # (Cout, Bblk*HW)

        # Folded BN + conv bias (f32) and ReLU, lane-dense.
        y = jnp.maximum(conv_full * scale_ref[...] + bias_ref[...], 0.0)

        # Lane-aligned (Cout, HW) stores per image (HW is a multiple of 128 here).
        for b in range(bblk):
            o_ref[b] = y[:, b * hw:(b + 1) * hw].astype(o_ref.dtype)

    return kernel


def down_conv_pallas(x_nchw, w_oihw, eff_scale, eff_bias, images_per_step=None):
    """x_nchw: (N, Cin, H, W) f32, w_oihw: (Cout, Cin, 3, 3) f32 -> (N, Cout, H-2, W-2) f32."""
    N, Cin, H, W = x_nchw.shape
    Cout = w_oihw.shape[0]
    Ho, Wo = H - 2, W - 2
    HW = H * W
    K = 9 * Cin

    # Whole batch per grid step by default: fewest steps on the single-TC v5e/v6e.
    # On v7x pass images_per_step = N // 2 so the "parallel" batch axis feeds both TCs.
    if images_per_step is None:
        images_per_step = N
    assert N % images_per_step == 0, (N, images_per_step)
    Bblk = images_per_step
    num_steps = N // Bblk

    # Right pad scales with W (max tap offset is 2*W + 2), rounded up to full lanes.
    pad = ((2 * W + 2 + 127) // 128) * 128

    # Free, contiguous reshape (no transpose): spatial flattened onto the lane axis.
    x_flat = x_nchw.reshape(N, Cin, HW)

    # (Cout, Cin, 3, 3) -> (Cout, 9*Cin) with columns [tap*Cin + ci]; tiny constant prep.
    w_mat = jnp.transpose(w_oihw, (0, 2, 3, 1)).reshape(Cout, K).astype(jnp.bfloat16)

    scale2 = eff_scale.reshape(Cout, 1).astype(jnp.float32)
    bias2 = eff_bias.reshape(Cout, 1).astype(jnp.float32)

    kernel = make_down_conv_kernel(W, Bblk)

    # VMEM per step is ~Bblk*HW*(Cin+Cout)*4 B + K*Bblk*HW*2 B  (< 100 KB here), well
    # under every generation's scoped default; no vmem_limit_bytes override needed.
    # When scaled to halo'd row strips: size the strip for 64 MiB on v7x (128 MiB on
    # v5e/v6e), set vmem_limit_bytes explicitly, and single-buffer the grid-invariant
    # operands (pipeline_mode=pl.Buffered(1)) -- here they total < 1 KB so the default
    # double-buffering is immaterial.
    out3 = pl.pallas_call(
        kernel,
        out_shape=jax.ShapeDtypeStruct((N, Cout, HW), jnp.float32),
        grid=(num_steps,),
        in_specs=[
            pl.BlockSpec((Bblk, Cin, HW), lambda n: (n, 0, 0)),
            pl.BlockSpec((Cout, K), lambda n: (0, 0)),
            pl.BlockSpec((Cout, 1), lambda n: (0, 0)),
            pl.BlockSpec((Cout, 1), lambda n: (0, 0)),
        ],
        out_specs=pl.BlockSpec((Bblk, Cout, HW), lambda n: (n, 0, 0)),
        scratch_shapes=[
            pltpu.VMEM((Cin, HW + pad), jnp.float32),     # zero-padded image (f32)
            pltpu.VMEM((K, Bblk * HW), jnp.bfloat16),     # im2col matrix (bf16)
        ],
        compiler_params=pltpu.CompilerParams(
            dimension_semantics=("parallel",)),            # batch axis -> both v7x TCs
    )(x_flat, w_mat, scale2, bias2)

    # Wrapper-side valid-region trim: free contiguous reshape + one slice
    # (replaces the old in-kernel compaction matmul).
    return out3.reshape(N, Cout, H, W)[:, :, :Ho, :Wo]


def reference(x_nchw, w_oihw, eff_scale, eff_bias):
    """Pure-JAX f32 reference: valid 3x3 conv + folded affine + ReLU (NCHW in/out)."""
    y = lax.conv_general_dilated(
        x_nchw, w_oihw, window_strides=(1, 1), padding="VALID",
        dimension_numbers=("NCHW", "OIHW", "NCHW"))
    y = y * eff_scale[None, :, None, None] + eff_bias[None, :, None, None]
    return jnp.maximum(y, 0.0)


def reference_bf16_inputs(x_nchw, w_oihw, eff_scale, eff_bias):
    """Reference with conv operands rounded to bf16 (matches the kernel's MXU inputs)."""
    xb = x_nchw.astype(jnp.bfloat16).astype(jnp.float32)
    wb = w_oihw.astype(jnp.bfloat16).astype(jnp.float32)
    return reference(xb, wb, eff_scale, eff_bias)


if __name__ == "__main__":
    # Small shapes consistent with the module: batch=2, ch_in=4, ch_out=8, spatial=16.
    N, Cin, Cout, H, W = 2, 4, 8, 16, 16
    eps = 1e-5

    key = jax.random.PRNGKey(0)
    k_x, k_w, k_b, k_g, k_beta, k_rm, k_rv = jax.random.split(key, 7)

    x = jax.random.normal(k_x, (N, Cin, H, W), jnp.float32)

    # Conv parameters (PyTorch layout OIHW), deterministic synthetic init.
    w_oihw = jax.random.normal(k_w, (Cout, Cin, 3, 3), jnp.float32) * 0.1
    conv_b = jax.random.normal(k_b, (Cout,), jnp.float32) * 0.1

    # BatchNorm2d parameters / running stats (inference mode).
    gamma = 1.0 + 0.1 * jax.random.normal(k_g, (Cout,), jnp.float32)
    beta = 0.1 * jax.random.normal(k_beta, (Cout,), jnp.float32)
    run_mean = 0.1 * jax.random.normal(k_rm, (Cout,), jnp.float32)
    run_var = jnp.abs(1.0 + 0.1 * jax.random.normal(k_rv, (Cout,), jnp.float32))

    # Fold BN + conv bias:  relu(scale * conv(x, W) + bias)
    eff_scale = gamma / jnp.sqrt(run_var + eps)
    eff_bias = eff_scale * (conv_b - run_mean) + beta

    out = down_conv_pallas(x, w_oihw, eff_scale, eff_bias)
    out = jax.block_until_ready(out)

    assert out.shape == (N, Cout, H - 2, W - 2), out.shape

    # Tight check against a reference with the same bf16 rounding of the conv operands
    # (kernel accumulates in f32; only summation-order noise remains).
    ref_bf = reference_bf16_inputs(x, w_oihw, eff_scale, eff_bias)
    err_bf = float(jnp.max(jnp.abs(out - ref_bf)))
    assert jnp.allclose(out, ref_bf, atol=1e-4, rtol=1e-4), err_bf

    # Loose sanity check against the pure-f32 module semantics (bf16 operand rounding only).
    ref_f32 = reference(x, w_oihw, eff_scale, eff_bias)
    err_f32 = float(jnp.max(jnp.abs(out - ref_f32)))
    assert jnp.allclose(out, ref_f32, atol=5e-2, rtol=5e-2), err_f32

    print("KERNEL_OK")
</pallas_src>

<mosaic_0001>
module attributes {stable_mosaic.version = 11 : i64} {
  func.func @kernel(%arg0: i32, %arg1: memref<2x4x256xf32, #tpu.memory_space<vmem>>, %arg2: memref<8x36xbf16, #tpu.memory_space<vmem>>, %arg3: memref<8x1xf32, #tpu.memory_space<vmem>>, %arg4: memref<8x1xf32, #tpu.memory_space<vmem>>, %arg5: memref<2x8x256xf32, #tpu.memory_space<vmem>>, %arg6: memref<4x384xf32, #tpu.memory_space<vmem>>, %arg7: memref<36x512xbf16, #tpu.memory_space<vmem>>) attributes {dimension_semantics = [#tpu.dimension_semantics<parallel>], iteration_bounds = array<i64: 1>, scalar_prefetch = 0 : i64, scratch_operands = 2 : i64, tpu.core_type = #tpu.core_type<tc>, window_params = [{transform_indices = @transform_0, window_bounds = array<i64: 2, 4, 256>}, {pipeline_mode = #tpu.pipeline_mode<synchronous>, transform_indices = @transform_1, window_bounds = array<i64: 8, 36>}, {pipeline_mode = #tpu.pipeline_mode<synchronous>, transform_indices = @transform_2, window_bounds = array<i64: 8, 1>}, {pipeline_mode = #tpu.pipeline_mode<synchronous>, transform_indices = @transform_3, window_bounds = array<i64: 8, 1>}, {transform_indices = @transform_4, window_bounds = array<i64: 2, 8, 256>}]} {
    %cst = arith.constant 0.000000e+00 : f32
    %0 = vector.broadcast %cst : f32 to vector<4x128xf32>
    %c0 = arith.constant 0 : index
    %c256 = arith.constant 256 : index
    %1 = vector.load %arg6[%c0, %c256] : memref<4x384xf32, #tpu.memory_space<vmem>>, vector<4x128xf32>
    tpu.vector_store %arg6[%c0, %c256], %0 {strides = array<i32>} : memref<4x384xf32, #tpu.memory_space<vmem>>, vector<4x128xf32>,
    %c0_0 = arith.constant 0 : index
    %c0_1 = arith.constant 0 : index
    %c0_2 = arith.constant 0 : index
    %2 = vector.load %arg1[%c0_0, %c0_1, %c0_2] : memref<2x4x256xf32, #tpu.memory_space<vmem>>, vector<1x4x256xf32>
    %3 = vector.shape_cast %2 : vector<1x4x256xf32> to vector<4x256xf32>
    %c0_3 = arith.constant 0 : index
    %c0_4 = arith.constant 0 : index
    %4 = vector.load %arg6[%c0_3, %c0_4] : memref<4x384xf32, #tpu.memory_space<vmem>>, vector<4x256xf32>
    tpu.vector_store %arg6[%c0_3, %c0_4], %3 {strides = array<i32>} : memref<4x384xf32, #tpu.memory_space<vmem>>, vector<4x256xf32>,
    %c0_5 = arith.constant 0 : index
    %c0_6 = arith.constant 0 : index
    %5 = vector.load %arg6[%c0_5, %c0_6] : memref<4x384xf32, #tpu.memory_space<vmem>>, vector<4x256xf32>
    %6 = arith.truncf %5 : vector<4x256xf32> to vector<4x256xbf16>
    %c0_7 = arith.constant 0 : index
    %c0_8 = arith.constant 0 : index
    %7 = vector.load %arg7[%c0_7, %c0_8] : memref<36x512xbf16, #tpu.memory_space<vmem>>, vector<4x256xbf16>
    tpu.vector_store %arg7[%c0_7, %c0_8], %6 {strides = array<i32>} : memref<36x512xbf16, #tpu.memory_space<vmem>>, vector<4x256xbf16>,
    %c0_9 = arith.constant 0 : index
    %c1 = arith.constant 1 : index
    %8 = vector.load %arg6[%c0_9, %c1] : memref<4x384xf32, #tpu.memory_space<vmem>>, vector<4x256xf32>
    %9 = arith.truncf %8 : vector<4x256xf32> to vector<4x256xbf16>
    %c4 = arith.constant 4 : index
    %c0_10 = arith.constant 0 : index
    %10 = vector.load %arg7[%c4, %c0_10] : memref<36x512xbf16, #tpu.memory_space<vmem>>, vector<4x256xbf16>
    tpu.vector_store %arg7[%c4, %c0_10], %9 {strides = array<i32>} : memref<36x512xbf16, #tpu.memory_space<vmem>>, vector<4x256xbf16>,
    %c0_11 = arith.constant 0 : index
    %c2 = arith.constant 2 : index
    %11 = vector.load %arg6[%c0_11, %c2] : memref<4x384xf32, #tpu.memory_space<vmem>>, vector<4x256xf32>
    %12 = arith.truncf %11 : vector<4x256xf32> to vector<4x256xbf16>
    %c8 = arith.constant 8 : index
    %c0_12 = arith.constant 0 : index
    %13 = vector.load %arg7[%c8, %c0_12] : memref<36x512xbf16, #tpu.memory_space<vmem>>, vector<4x256xbf16>
    tpu.vector_store %arg7[%c8, %c0_12], %12 {strides = array<i32>} : memref<36x512xbf16, #tpu.memory_space<vmem>>, vector<4x256xbf16>,
    %c0_13 = arith.constant 0 : index
    %c16 = arith.constant 16 : index
    %14 = vector.load %arg6[%c0_13, %c16] : memref<4x384xf32, #tpu.memory_space<vmem>>, vector<4x256xf32>
    %15 = arith.truncf %14 : vector<4x256xf32> to vector<4x256xbf16>
    %c12 = arith.constant 12 : index
    %c0_14 = arith.constant 0 : index
    %16 = vector.load %arg7[%c12, %c0_14] : memref<36x512xbf16, #tpu.memory_space<vmem>>, vector<4x256xbf16>
    tpu.vector_store %arg7[%c12, %c0_14], %15 {strides = array<i32>} : memref<36x512xbf16, #tpu.memory_space<vmem>>, vector<4x256xbf16>,
    %c0_15 = arith.constant 0 : index
    %c17 = arith.constant 17 : index
    %17 = vector.load %arg6[%c0_15, %c17] : memref<4x384xf32, #tpu.memory_space<vmem>>, vector<4x256xf32>
    %18 = arith.truncf %17 : vector<4x256xf32> to vector<4x256xbf16>
    %c16_16 = arith.constant 16 : index
    %c0_17 = arith.constant 0 : index
    %19 = vector.load %arg7[%c16_16, %c0_17] : memref<36x512xbf16, #tpu.memory_space<vmem>>, vector<4x256xbf16>
    tpu.vector_store %arg7[%c16_16, %c0_17], %18 {strides = array<i32>} : memref<36x512xbf16, #tpu.memory_space<vmem>>, vector<4x256xbf16>,
    %c0_18 = arith.constant 0 : index
    %c18 = arith.constant 18 : index
    %20 = vector.load %arg6[%c0_18, %c18] : memref<4x384xf32, #tpu.memory_space<vmem>>, vector<4x256xf32>
    %21 = arith.truncf %20 : vector<4x256xf32> to vector<4x256xbf16>
    %c20 = arith.constant 20 : index
    %c0_19 = arith.constant 0 : index
    %22 = vector.load %arg7[%c20, %c0_19] : memref<36x512xbf16, #tpu.memory_space<vmem>>, vector<4x256xbf16>
    tpu.vector_store %arg7[%c20, %c0_19], %21 {strides = array<i32>} : memref<36x512xbf16, #tpu.memory_space<vmem>>, vector<4x256xbf16>,
    %c0_20 = arith.constant 0 : index
    %c32 = arith.constant 32 : index
    %23 = vector.load %arg6[%c0_20, %c32] : memref<4x384xf32, #tpu.memory_space<vmem>>, vector<4x256xf32>
    %24 = arith.truncf %23 : vector<4x256xf32> to vector<4x256xbf16>
    %c24 = arith.constant 24 : index
    %c0_21 = arith.constant 0 : index
    %25 = vector.load %arg7[%c24, %c0_21] : memref<36x512xbf16, #tpu.memory_space<vmem>>, vector<4x256xbf16>
    tpu.vector_store %arg7[%c24, %c0_21], %24 {strides = array<i32>} : memref<36x512xbf16, #tpu.memory_space<vmem>>, vector<4x256xbf16>,
    %c0_22 = arith.constant 0 : index
    %c33 = arith.constant 33 : index
    %26 = vector.load %arg6[%c0_22, %c33] : memref<4x384xf32, #tpu.memory_space<vmem>>, vector<4x256xf32>
    %27 = arith.truncf %26 : vector<4x256xf32> to vector<4x256xbf16>
    %c28 = arith.constant 28 : index
    %c0_23 = arith.constant 0 : index
    %28 = vector.load %arg7[%c28, %c0_23] : memref<36x512xbf16, #tpu.memory_space<vmem>>, vector<4x256xbf16>
    tpu.vector_store %arg7[%c28, %c0_23], %27 {strides = array<i32>} : memref<36x512xbf16, #tpu.memory_space<vmem>>, vector<4x256xbf16>,
    %c0_24 = arith.constant 0 : index
    %c34 = arith.constant 34 : index
    %29 = vector.load %arg6[%c0_24, %c34] : memref<4x384xf32, #tpu.memory_space<vmem>>, vector<4x256xf32>
    %30 = arith.truncf %29 : vector<4x256xf32> to vector<4x256xbf16>
    %c32_25 = arith.constant 32 : index
    %c0_26 = arith.constant 0 : index
    %31 = vector.load %arg7[%c32_25, %c0_26] : memref<36x512xbf16, #tpu.memory_space<vmem>>, vector<4x256xbf16>
    tpu.vector_store %arg7[%c32_25, %c0_26], %30 {strides = array<i32>} : memref<36x512xbf16, #tpu.memory_space<vmem>>, vector<4x256xbf16>,
    %c1_27 = arith.constant 1 : index
    %c0_28 = arith.constant 0 : index
    %c0_29 = arith.constant 0 : index
    %32 = vector.load %arg1[%c1_27, %c0_28, %c0_29] : memref<2x4x256xf32, #tpu.memory_space<vmem>>, vector<1x4x256xf32>
    %33 = vector.shape_cast %32 : vector<1x4x256xf32> to vector<4x256xf32>
    %c0_30 = arith.constant 0 : index
    %c0_31 = arith.constant 0 : index
    %34 = vector.load %arg6[%c0_30, %c0_31] : memref<4x384xf32, #tpu.memory_space<vmem>>, vector<4x256xf32>
    tpu.vector_store %arg6[%c0_30, %c0_31], %33 {strides = array<i32>} : memref<4x384xf32, #tpu.memory_space<vmem>>, vector<4x256xf32>,
    %c0_32 = arith.constant 0 : index
    %c0_33 = arith.constant 0 : index
    %35 = vector.load %arg6[%c0_32, %c0_33] : memref<4x384xf32, #tpu.memory_space<vmem>>, vector<4x256xf32>
    %36 = arith.truncf %35 : vector<4x256xf32> to vector<4x256xbf16>
    %c0_34 = arith.constant 0 : index
    %c256_35 = arith.constant 256 : index
    %37 = vector.load %arg7[%c0_34, %c256_35] : memref<36x512xbf16, #tpu.memory_space<vmem>>, vector<4x256xbf16>
    tpu.vector_store %arg7[%c0_34, %c256_35], %36 {strides = array<i32>} : memref<36x512xbf16, #tpu.memory_space<vmem>>, vector<4x256xbf16>,
    %c0_36 = arith.constant 0 : index
    %c1_37 = arith.constant 1 : index
    %38 = vector.load %arg6[%c0_36, %c1_37] : memref<4x384xf32, #tpu.memory_space<vmem>>, vector<4x256xf32>
    %39 = arith.truncf %38 : vector<4x256xf32> to vector<4x256xbf16>
    %c4_38 = arith.constant 4 : index
    %c256_39 = arith.constant 256 : index
    %40 = vector.load %arg7[%c4_38, %c256_39] : memref<36x512xbf16, #tpu.memory_space<vmem>>, vector<4x256xbf16>
    tpu.vector_store %arg7[%c4_38, %c256_39], %39 {strides = array<i32>} : memref<36x512xbf16, #tpu.memory_space<vmem>>, vector<4x256xbf16>,
    %c0_40 = arith.constant 0 : index
    %c2_41 = arith.constant 2 : index
    %41 = vector.load %arg6[%c0_40, %c2_41] : memref<4x384xf32, #tpu.memory_space<vmem>>, vector<4x256xf32>
    %42 = arith.truncf %41 : vector<4x256xf32> to vector<4x256xbf16>
    %c8_42 = arith.constant 8 : index
    %c256_43 = arith.constant 256 : index
    %43 = vector.load %arg7[%c8_42, %c256_43] : memref<36x512xbf16, #tpu.memory_space<vmem>>, vector<4x256xbf16>
    tpu.vector_store %arg7[%c8_42, %c256_43], %42 {strides = array<i32>} : memref<36x512xbf16, #tpu.memory_space<vmem>>, vector<4x256xbf16>,
    %c0_44 = arith.constant 0 : index
    %c16_45 = arith.constant 16 : index
    %44 = vector.load %arg6[%c0_44, %c16_45] : memref<4x384xf32, #tpu.memory_space<vmem>>, vector<4x256xf32>
    %45 = arith.truncf %44 : vector<4x256xf32> to vector<4x256xbf16>
    %c12_46 = arith.constant 12 : index
    %c256_47 = arith.constant 256 : index
    %46 = vector.load %arg7[%c12_46, %c256_47] : memref<36x512xbf16, #tpu.memory_space<vmem>>, vector<4x256xbf16>
    tpu.vector_store %arg7[%c12_46, %c256_47], %45 {strides = array<i32>} : memref<36x512xbf16, #tpu.memory_space<vmem>>, vector<4x256xbf16>,
    %c0_48 = arith.constant 0 : index
    %c17_49 = arith.constant 17 : index
    %47 = vector.load %arg6[%c0_48, %c17_49] : memref<4x384xf32, #tpu.memory_space<vmem>>, vector<4x256xf32>
    %48 = arith.truncf %47 : vector<4x256xf32> to vector<4x256xbf16>
    %c16_50 = arith.constant 16 : index
    %c256_51 = arith.constant 256 : index
    %49 = vector.load %arg7[%c16_50, %c256_51] : memref<36x512xbf16, #tpu.memory_space<vmem>>, vector<4x256xbf16>
    tpu.vector_store %arg7[%c16_50, %c256_51], %48 {strides = array<i32>} : memref<36x512xbf16, #tpu.memory_space<vmem>>, vector<4x256xbf16>,
    %c0_52 = arith.constant 0 : index
    %c18_53 = arith.constant 18 : index
    %50 = vector.load %arg6[%c0_52, %c18_53] : memref<4x384xf32, #tpu.memory_space<vmem>>, vector<4x256xf32>
    %51 = arith.truncf %50 : vector<4x256xf32> to vector<4x256xbf16>
    %c20_54 = arith.constant 20 : index
    %c256_55 = arith.constant 256 : index
    %52 = vector.load %arg7[%c20_54, %c256_55] : memref<36x512xbf16, #tpu.memory_space<vmem>>, vector<4x256xbf16>
    tpu.vector_store %arg7[%c20_54, %c256_55], %51 {strides = array<i32>} : memref<36x512xbf16, #tpu.memory_space<vmem>>, vector<4x256xbf16>,
    %c0_56 = arith.constant 0 : index
    %c32_57 = arith.constant 32 : index
    %53 = vector.load %arg6[%c0_56, %c32_57] : memref<4x384xf32, #tpu.memory_space<vmem>>, vector<4x256xf32>
    %54 = arith.truncf %53 : vector<4x256xf32> to vector<4x256xbf16>
    %c24_58 = arith.constant 24 : index
    %c256_59 = arith.constant 256 : index
    %55 = vector.load %arg7[%c24_58, %c256_59] : memref<36x512xbf16, #tpu.memory_space<vmem>>, vector<4x256xbf16>
    tpu.vector_store %arg7[%c24_58, %c256_59], %54 {strides = array<i32>} : memref<36x512xbf16, #tpu.memory_space<vmem>>, vector<4x256xbf16>,
    %c0_60 = arith.constant 0 : index
    %c33_61 = arith.constant 33 : index
    %56 = vector.load %arg6[%c0_60, %c33_61] : memref<4x384xf32, #tpu.memory_space<vmem>>, vector<4x256xf32>
    %57 = arith.truncf %56 : vector<4x256xf32> to vector<4x256xbf16>
    %c28_62 = arith.constant 28 : index
    %c256_63 = arith.constant 256 : index
    %58 = vector.load %arg7[%c28_62, %c256_63] : memref<36x512xbf16, #tpu.memory_space<vmem>>, vector<4x256xbf16>
    tpu.vector_store %arg7[%c28_62, %c256_63], %57 {strides = array<i32>} : memref<36x512xbf16, #tpu.memory_space<vmem>>, vector<4x256xbf16>,
    %c0_64 = arith.constant 0 : index
    %c34_65 = arith.constant 34 : index
    %59 = vector.load %arg6[%c0_64, %c34_65] : memref<4x384xf32, #tpu.memory_space<vmem>>, vector<4x256xf32>
    %60 = arith.truncf %59 : vector<4x256xf32> to vector<4x256xbf16>
    %c32_66 = arith.constant 32 : index
    %c256_67 = arith.constant 256 : index
    %61 = vector.load %arg7[%c32_66, %c256_67] : memref<36x512xbf16, #tpu.memory_space<vmem>>, vector<4x256xbf16>
    tpu.vector_store %arg7[%c32_66, %c256_67], %60 {strides = array<i32>} : memref<36x512xbf16, #tpu.memory_space<vmem>>, vector<4x256xbf16>,
    %c0_68 = arith.constant 0 : index
    %c0_69 = arith.constant 0 : index
    %62 = vector.load %arg2[%c0_68, %c0_69] : memref<8x36xbf16, #tpu.memory_space<vmem>>, vector<8x36xbf16>
    %c0_70 = arith.constant 0 : index
    %c0_71 = arith.constant 0 : index
    %63 = vector.load %arg7[%c0_70, %c0_71] : memref<36x512xbf16, #tpu.memory_space<vmem>>, vector<36x512xbf16>
    %cst_72 = arith.constant dense<0.000000e+00> : vector<8x512xf32>
    %64 = tpu.matmul %62, %63, %cst_72 {dimension_numbers = #tpu.dot_dimension_numbers<[1], [0], [0], [1], [0, 0, 1, 1], [], []>} : vector<8x36xbf16>, vector<36x512xbf16>, vector<8x512xf32> -> vector<8x512xf32>
    %c0_73 = arith.constant 0 : index
    %c0_74 = arith.constant 0 : index
    %65 = vector.load %arg3[%c0_73, %c0_74] : memref<8x1xf32, #tpu.memory_space<vmem>>, vector<8x1xf32>
    %66 = vector.broadcast %65 : vector<8x1xf32> to vector<8x512xf32>
    %67 = arith.mulf %64, %66 : vector<8x512xf32>
    %c0_75 = arith.constant 0 : index
    %c0_76 = arith.constant 0 : index
    %68 = vector.load %arg4[%c0_75, %c0_76] : memref<8x1xf32, #tpu.memory_space<vmem>>, vector<8x1xf32>
    %69 = vector.broadcast %68 : vector<8x1xf32> to vector<8x512xf32>
    %70 = arith.addf %67, %69 : vector<8x512xf32>
    %cst_77 = arith.constant 0.000000e+00 : f32
    %71 = vector.broadcast %cst_77 : f32 to vector<8x512xf32>
    %72 = arith.maximumf %70, %71 : vector<8x512xf32>
    %73 = vector.extract_strided_slice %72 {offsets = [0, 0], sizes = [8, 256], strides = [1, 1]} : vector<8x512xf32> to vector<8x256xf32>
    %c0_78 = arith.constant 0 : index
    %c0_79 = arith.constant 0 : index
    %c0_80 = arith.constant 0 : index
    %74 = vector.load %arg5[%c0_78, %c0_79, %c0_80] : memref<2x8x256xf32, #tpu.memory_space<vmem>>, vector<1x8x256xf32>
    %75 = vector.shape_cast %74 : vector<1x8x256xf32> to vector<8x256xf32>
    %76 = vector.shape_cast %73 : vector<8x256xf32> to vector<1x8x256xf32>
    tpu.vector_store %arg5[%c0_78, %c0_79, %c0_80], %76 {strides = array<i32>} : memref<2x8x256xf32, #tpu.memory_space<vmem>>, vector<1x8x256xf32>,
    %77 = vector.extract_strided_slice %72 {offsets = [0, 256], sizes = [8, 256], strides = [1, 1]} : vector<8x512xf32> to vector<8x256xf32>
    %c1_81 = arith.constant 1 : index
    %c0_82 = arith.constant 0 : index
    %c0_83 = arith.constant 0 : index
    %78 = vector.load %arg5[%c1_81, %c0_82, %c0_83] : memref<2x8x256xf32, #tpu.memory_space<vmem>>, vector<1x8x256xf32>
    %79 = vector.shape_cast %78 : vector<1x8x256xf32> to vector<8x256xf32>
    %80 = vector.shape_cast %77 : vector<8x256xf32> to vector<1x8x256xf32>
    tpu.vector_store %arg5[%c1_81, %c0_82, %c0_83], %80 {strides = array<i32>} : memref<2x8x256xf32, #tpu.memory_space<vmem>>, vector<1x8x256xf32>,
    return
  }
  func.func @transform_0(%arg0: i32) -> (i32, i32, i32) {
    %c0_i32 = arith.constant 0 : i32
    %c0_i32_0 = arith.constant 0 : i32
    %c0_i32_1 = arith.constant 0 : i32
    return %arg0, %c0_i32, %c0_i32_0 : i32, i32, i32
  }
  func.func @transform_1(%arg0: i32) -> (i32, i32) {
    %c0_i32 = arith.constant 0 : i32
    %c0_i32_0 = arith.constant 0 : i32
    %c0_i32_1 = arith.constant 0 : i32
    return %c0_i32, %c0_i32_0 : i32, i32
  }
  func.func @transform_2(%arg0: i32) -> (i32, i32) {
    %c0_i32 = arith.constant 0 : i32
    %c0_i32_0 = arith.constant 0 : i32
    %c0_i32_1 = arith.constant 0 : i32
    return %c0_i32, %c0_i32_0 : i32, i32
  }
  func.func @transform_3(%arg0: i32) -> (i32, i32) {
    %c0_i32 = arith.constant 0 : i32
    %c0_i32_0 = arith.constant 0 : i32
    %c0_i32_1 = arith.constant 0 : i32
    return %c0_i32, %c0_i32_0 : i32, i32
  }
  func.func @transform_4(%arg0: i32) -> (i32, i32, i32) {
    %c0_i32 = arith.constant 0 : i32
    %c0_i32_0 = arith.constant 0 : i32
    %c0_i32_1 = arith.constant 0 : i32
    return %arg0, %c0_i32, %c0_i32_0 : i32, i32, i32
  }
}

</mosaic_0001>

<bundles_post_ra>
// kernel: tpu_custom_call.1
= control target key start
LH: loop header
LB: loop body
LE: loop exit
PB: predicated region body
PF: predicated region fallthrough
CT: control target
= control target key end

     0   :  { %v839_v2 = vmov 0.0   ;;  %s950_s0 = inlined_call_operand.vmem [shape: f32[2,4,256], index: 0, kind: input, shape index: {}]   ;;  %s951_s1 = inlined_call_operand.vmem [shape: bf16[8,36], index: 1, kind: input, shape index: {}]   ;;  %s952_s2 = inlined_call_operand.vmem [shape: f32[8,1], index: 2, kind: input, shape index: {}]   ;;  %s953_s3 = inlined_call_operand.vmem [shape: f32[8,1], index: 3, kind: input, shape index: {}]   ;;  %s954_s4 = inlined_call_operand.hbm [shape: f32[2,8,256], index: 4, kind: output, shape index: {}]  }
   0x1   :  { %v20_v0 = vld [vmem:[%s950_s0] sm:$0xff]  ;;  %v714_v1 = vld [vmem:[%s950_s0 + $0x8] sm:$0xff]  ;;  %19 = vst [vmem:[#allocation2 + $0x8] sm:$0xf] %v839_v2 }
   0x2   :  { %v68_v3 = vcombine.high %v20_v0, %v20_v0  ;;  %v307_v4 = vcombine.high %v714_v1, %v714_v1 }
   0x3   :  { %9 = vsyncpa [#allocation5], 0  ;;  %s840_s19 = smov 126   ;;  %s841_s0 = smov 127   ;;  %v848_v49 = vmov 0   ;;  %v652_v50 = vld [vmem:[%s952_s2] sm:$0xff] }
   0x4   :  { %v883_v5 = vpack.c.bf16 %v68_v3, %v20_v0  ;;  %v885_v6 = vpack.c.bf16 %v307_v4, %v714_v1  ;;  %s842_s20 = smov 112   ;;  %s843_s21 = smov 111   ;;  %602 = vmatprep.mubr.bf16.mxu0 %v848_v49  ;;  %643 = vmatprep.mubr.bf16.mxu1 %v848_v49  ;;  %v662_v51 = vld [vmem:[%s953_s3] sm:$0xff]  ;;  %vm59_vm0 = vcmask 1043456   ;;  %vm88_vm1 = vcmask 1031168  }
   0x5   :  { %s844_s22 = smov 110   ;;  %s845_s23 = smov 96   ;;  %796 = vset.pattern.permute.xlu1 %v848_v49  ;;  %795 = vset.pattern.permute.xlu0 %v848_v49  ;;  %vm61_vm2 = vcmask 1039360   ;;  %vm117_vm3 = vcmask 916480   ;;  %vm144_vm4 = vcmask 908288   ;;  %vm173_vm5 = vcmask 900096  }
   0x6   :  { %34 = vst [vmem:[#allocation3] sm:$0x33] %v883_v5  ;;  %275 = vst [vmem:[#allocation3 + $0x8] sm:$0x33] %v885_v6  ;;  %v51_v15 = vrot.slane %v883_v5, 6  ;;  %v292_v23 = vrot.slane %v885_v6, 6 }
   0x7   :  { %s846_s24 = smov 95   ;;  %s847_s25 = smov 94   ;;  %vm200_vm6 = vcmask 785408   ;;  %vm229_vm7 = vcmask 777216   ;;  %vm256_vm8 = vcmask 769024   ;;  %vm557_vm9 = vcmask 1041408  }
   0x8   :  { %v66_v7 = vld [vmem:[#allocation2 + $0x8] sm:$0xf]  ;;  %vm553_vm10 = vcmask 293888  }
   0x9   :  { %v36_v8 = vld [vmem:[#allocation2 + $0x8] sm:$0xf]  ;;  %v752_v10 = vpack.c.bf16 %v66_v7, %v66_v7 }
   0xa   :  { %v93_v9 = vld [vmem:[#allocation2 + $0x8] sm:$0xf]  ;;  %v750_v11 = vpack.c.bf16 %v36_v8, %v36_v8 }
   0xb   :  { %83 = vrot.lane.b32.xlu1 %v752_v10, %s840_s19  ;;  %v754_v13 = vpack.c.bf16 %v93_v9, %v93_v9  ;;  %v277_v14 = vld [vmem:[#allocation2 + $0x8] sm:$0xf] }
   0xc   :  { %v52_v12 = vrot.slane %v750_v11, 6  ;;  %v767_v17 = vpack.c.bf16 %v277_v14, %v277_v14  ;;  %v305_v19 = vld [vmem:[#allocation2 + $0x8] sm:$0xf] }
   0xd   :  { %v109_v16 = vrot.slane %v754_v13, 6  ;;  %v331_v20 = vld [vmem:[#allocation2 + $0x8] sm:$0xf]  ;;  %v769_v21 = vpack.c.bf16 %v305_v19, %v305_v19 }
   0xe   :  { %55 = vrot.lane.b32.xlu0 %v52_v12, %s841_s0  ;;  %v293_v18 = vrot.slane %v767_v17, 6  ;;  %v771_v22 = vpack.c.bf16 %v331_v20, %v331_v20  ;;  %v122_v25 = vld [vmem:[#allocation2 + $0x8] sm:$0xf] }
   0xf   :  { %81 = vrot.lane.b32.xlu1 %v883_v5, %s840_s19  ;;  %v149_v26 = vld [vmem:[#allocation2 + $0x8] sm:$0xf]  ;;  %v756_v27 = vpack.c.bf16 %v122_v25, %v122_v25 }
  0x10   :  { %v347_v24 = vrot.slane %v771_v22, 6  ;;  %v758_v28 = vpack.c.bf16 %v149_v26, %v149_v26  ;;  %v178_v30 = vld [vmem:[#allocation2 + $0x8] sm:$0xf] }
  0x11   :  { %v205_v31 = vld [vmem:[#allocation2 + $0x8] sm:$0xf]  ;;  %v760_v32 = vpack.c.bf16 %v178_v30, %v178_v30 }
  0x12   :  { %53 = vrot.lane.b32.xlu0 %v51_v15, %s841_s0  ;;  %v165_v29 = vrot.slane %v758_v28, 6  ;;  %v762_v33 = vpack.c.bf16 %v205_v31, %v205_v31  ;;  %v359_v35 = vld [vmem:[#allocation2 + $0x8] sm:$0xf] }
  0x13   :  { %112 = vrot.lane.b32.xlu1 %v109_v16, %s842_s20  ;;  %v385_v36 = vld [vmem:[#allocation2 + $0x8] sm:$0xf]  ;;  %v773_v37 = vpack.c.bf16 %v359_v35, %v359_v35 }
  0x14   :  { %v221_v34 = vrot.slane %v762_v33, 6  ;;  %v775_v38 = vpack.c.bf16 %v385_v36, %v385_v36  ;;  %v413_v40 = vld [vmem:[#allocation2 + $0x8] sm:$0xf] }
  0x15   :  { %v439_v41 = vld [vmem:[#allocation2 + $0x8] sm:$0xf]  ;;  %v777_v42 = vpack.c.bf16 %v413_v40, %v413_v40 }
  0x16   :  { %110 = vrot.lane.b32.xlu0 %v51_v15, %s842_s20  ;;  %v401_v39 = vrot.slane %v775_v38, 6  ;;  %v779_v43 = vpack.c.bf16 %v439_v41, %v439_v41  ;;  %v234_v45 = vld [vmem:[#allocation2 + $0x8] sm:$0xf] }
  0x17   :  { %296 = vrot.lane.b32.xlu1 %v293_v18, %s841_s0  ;;  %v764_v46 = vpack.c.bf16 %v234_v45, %v234_v45  ;;  %v467_v47 = vld [vmem:[#allocation2 + $0x8] sm:$0xf] }
  0x18   :  { %v455_v44 = vrot.slane %v779_v43, 6  ;;  %v781_v48 = vpack.c.bf16 %v467_v47, %v467_v47 }
  0x1a   :  { %320 = vrot.lane.b32.xlu0 %v885_v6, %s840_s19 }
  0x1b   :  { %322 = vrot.lane.b32.xlu1 %v769_v21, %s840_s19 }
  0x1e   :  { %294 = vrot.lane.b32.xlu0 %v292_v23, %s841_s0 }
  0x1f   :  { %350 = vrot.lane.b32.xlu1 %v347_v24, %s842_s20 }
  0x22   :  { %348 = vrot.lane.b32.xlu0 %v292_v23, %s842_s20 }
  0x23   :  { %139 = vrot.lane.b32.xlu1 %v756_v27, %s843_s21 }
  0x26   :  { %137 = vrot.lane.b32.xlu0 %v883_v5, %s843_s21 }
  0x27   :  { %168 = vrot.lane.b32.xlu1 %v165_v29, %s844_s22 }
  0x2a   :  { %166 = vrot.lane.b32.xlu0 %v51_v15, %s844_s22 }
  0x2b   :  { %195 = vrot.lane.b32.xlu1 %v760_v32, %s845_s23 }
  0x2e   :  { %193 = vrot.lane.b32.xlu0 %v883_v5, %s845_s23 }
  0x2f   :  { %224 = vrot.lane.b32.xlu1 %v221_v34, %s846_s24 }
  0x32   :  { %222 = vrot.lane.b32.xlu0 %v51_v15, %s846_s24 }
  0x33   :  { %376 = vrot.lane.b32.xlu1 %v773_v37, %s843_s21 }
  0x36   :  { %374 = vrot.lane.b32.xlu0 %v885_v6, %s843_s21 }
  0x37   :  { %404 = vrot.lane.b32.xlu1 %v401_v39, %s844_s22 }
  0x3a   :  { %402 = vrot.lane.b32.xlu0 %v292_v23, %s844_s22 }
  0x3b   :  { %430 = vrot.lane.b32.xlu1 %v777_v42, %s845_s23 }
  0x3e   :  { %428 = vrot.lane.b32.xlu0 %v885_v6, %s845_s23 }
  0x3f   :  { %458 = vrot.lane.b32.xlu1 %v455_v44, %s846_s24 }
  0x42   :  { %456 = vrot.lane.b32.xlu0 %v292_v23, %s846_s24 }
  0x43   :  { %251 = vrot.lane.b32.xlu1 %v764_v46, %s847_s25 }
  0x46   :  { %249 = vrot.lane.b32.xlu0 %v883_v5, %s847_s25 }
  0x47   :  { %484 = vrot.lane.b32.xlu1 %v781_v48, %s847_s25 }
  0x4a   :  { %482 = vrot.lane.b32.xlu0 %v885_v6, %s847_s25 }
  0x4b   :  { %665 = vperm.xlu1 %796, %v662_v51  }
  0x4e   :  { %655 = vperm.xlu0 %795, %v652_v50  }
  0x7d   :  { %v84_v52 = vpop.permute.xlu1 %83 }
  0x7e   :  { %v86_v55 = vrot.slane %v84_v52, 4 }
  0x80   :  { %v56_v53 = vpop.permute.xlu0 %55 }
  0x81   :  { %v82_v54 = vpop.permute.xlu1 %81  ;;  %v58_v58 = vrot.slane %v56_v53, 4 }
  0x82   :  { %v85_v56 = vrot.slane %v82_v54, 4 }
  0x84   :  { %v54_v57 = vpop.permute.xlu0 %53  ;;  %v87_v59 = vsel %vm59_vm0, %v85_v56, %v86_v55 }
  0x85   :  { %v57_v60 = vrot.slane %v54_v57, 4  ;;  %v89_v61 = vsel %vm88_vm1, %v82_v54, %v87_v59  ;;  %v113_v62 = vpop.permute.xlu1 %112 }
  0x86   :  { %91 = vst [vmem:[#allocation3 + $0x10] sm:$0x33] %v89_v61  ;;  %v115_v0 = vrot.slane %v113_v62, 4 }
  0x87   :  { %v60_v63 = vsel %vm59_vm0, %v57_v60, %v58_v58 }
  0x88   :  { %v62_v1 = vsel %vm61_vm2, %v54_v57, %v60_v63  ;;  %v111_v2 = vpop.permute.xlu0 %110 }
  0x89   :  { %64 = vst [vmem:[#allocation3] sm:$0xcc] %v62_v1  ;;  %v114_v3 = vrot.slane %v111_v2, 4  ;;  %v297_v4 = vpop.permute.xlu1 %296 }
  0x8a   :  { %v299_v12 = vrot.slane %v297_v4, 4 }
  0x8b   :  { %v116_v5 = vsel %vm59_vm0, %v114_v3, %v115_v0 }
  0x8c   :  { %v118_v6 = vsel %vm117_vm3, %v111_v2, %v116_v5  ;;  %v321_v7 = vpop.permute.xlu0 %320 }
  0x8d   :  { %120 = vst [vmem:[#allocation3 + $0x10] sm:$0xcc] %v118_v6  ;;  %v323_v8 = vpop.permute.xlu1 %322  ;;  %v324_v9 = vrot.slane %v321_v7, 4 }
  0x8e   :  { %v325_v10 = vrot.slane %v323_v8, 4 }
  0x90   :  { %v295_v11 = vpop.permute.xlu0 %294  ;;  %v326_v13 = vsel %vm59_vm0, %v324_v9, %v325_v10 }
  0x91   :  { %v298_v14 = vrot.slane %v295_v11, 4  ;;  %v327_v15 = vsel %vm88_vm1, %v321_v7, %v326_v13  ;;  %v351_v16 = vpop.permute.xlu1 %350 }
  0x92   :  { %329 = vst [vmem:[#allocation3 + $0x18] sm:$0x33] %v327_v15  ;;  %v353_v18 = vrot.slane %v351_v16, 4 }
  0x93   :  { %v300_v17 = vsel %vm59_vm0, %v298_v14, %v299_v12 }
  0x94   :  { %v301_v19 = vsel %vm61_vm2, %v295_v11, %v300_v17  ;;  %v349_v20 = vpop.permute.xlu0 %348  ;;  %v799_v21 = vld [vmem:[#allocation3 + $0x4] ss:$16 sps:$4 sm:$0xff]   ;;  %v801_v22 = vld [vmem:[#allocation3] ss:$16 sps:$4 sm:$0xff]  }
  0x95   :  { %303 = vst [vmem:[#allocation3 + $0x8] sm:$0xcc] %v301_v19  ;;  %v352_v23 = vrot.slane %v349_v20, 4  ;;  %570 = vmatprep.subr.bf16.mxu0 %v799_v21  ;;  %v140_v24 = vpop.permute.xlu1 %139 }
  0x96   :  { %v142_v26 = vrot.slane %v140_v24, 4  ;;  %571 = vmatpush1.bf16.msra.mxu0 %v801_v22 }
  0x97   :  { %v354_v25 = vsel %vm59_vm0, %v352_v23, %v353_v18 }
  0x98   :  { %v355_v27 = vsel %vm117_vm3, %v349_v20, %v354_v25  ;;  %v138_v28 = vpop.permute.xlu0 %137 }
  0x99   :  { %357 = vst [vmem:[#allocation3 + $0x18] sm:$0xcc] %v355_v27  ;;  %v141_v29 = vrot.slane %v138_v28, 4  ;;  %v169_v30 = vpop.permute.xlu1 %168 }
  0x9a   :  { %v171_v32 = vrot.slane %v169_v30, 4 }
  0x9b   :  { %v143_v31 = vsel %vm59_vm0, %v141_v29, %v142_v26 }
  0x9c   :  { %v145_v33 = vsel %vm144_vm4, %v138_v28, %v143_v31  ;;  %v167_v34 = vpop.permute.xlu0 %166 }
  0x9d   :  { %147 = vst [vmem:[#allocation3 + $0x20] sm:$0x33] %v145_v33  ;;  %v170_v35 = vrot.slane %v167_v34, 4  ;;  %v196_v36 = vpop.permute.xlu1 %195  ;;  %v492_v33 = vld [vmem:[%s951_s1] sm:$0xf]  ;;  %s849_s1 = smov [#allocation4]  }
  0x9e   :  { %v198_v38 = vrot.slane %v196_v36, 4  ;;  %s686_s30 = sshll.u32 %s849_s1, 4  ;;  %s687_s30 = int_to_ptr.vmem [resolvable:$true] %s686_s30 }
  0x9f   :  { %v172_v37 = vsel %vm59_vm0, %v170_v35, %v171_v32  ;;  %s815_s5 = scalar_lea.vmem %s687_s30, 512  ;;  %p820_p1 = scmp.lt.s32.totalorder %s687_s30, %s687_s30 }
  0xa0   :  { %v174_v39 = vsel %vm173_vm5, %v167_v34, %v172_v37  ;;  %v194_v40 = vpop.permute.xlu0 %193  ;;  %v802_v41 = vld [vmem:[#allocation3 + $0xc] ss:$16 sps:$4 sm:$0xff]   ;;  %v804_v42 = vld [vmem:[#allocation3 + $0x8] ss:$16 sps:$4 sm:$0xff]   ;;  %p816_p0 = scmp.ne.s32.totalorder %s687_s30, %s815_s5  ;;  %p821_p2 = scmp.lt.s32.totalorder %s815_s5, %s815_s5 }
  0xa1   :  { %176 = vst [vmem:[#allocation3 + $0x20] sm:$0xcc] %v174_v39  ;;  %v197_v43 = vrot.slane %v194_v40, 4  ;;  %611 = vmatprep.subr.bf16.mxu1 %v802_v41  ;;  %v225_v44 = vpop.permute.xlu1 %224 }
  0xa2   :  { %v227_v46 = vrot.slane %v225_v44, 4  ;;  %612 = vmatpush1.bf16.msra.mxu1 %v804_v42  ;;  %p822_p3 = por %p821_p2, %p820_p1 }
  0xa3   :  { %v199_v45 = vsel %vm59_vm0, %v197_v43, %v198_v38 }
  0xa4   :  { %v201_v47 = vsel %vm200_vm6, %v194_v40, %v199_v45  ;;  %v223_v48 = vpop.permute.xlu0 %222  ;;  %p823_p4 = pnand %p822_p3, %p816_p0 }
  0xa5   :  { %203 = vst [vmem:[#allocation3 + $0x30] sm:$0x33] %v201_v47  ;;  %v226_v49 = vrot.slane %v223_v48, 4  ;;  %v377_v50 = vpop.permute.xlu1 %376 }
  0xa6   :  { %v379_v52 = vrot.slane %v377_v50, 4 }
  0xa7   :  { %v228_v51 = vsel %vm59_vm0, %v226_v49, %v227_v46 }
  0xa8   :  { %v230_v53 = vsel %vm229_vm7, %v223_v48, %v228_v51  ;;  %v375_v54 = vpop.permute.xlu0 %374 }
  0xa9   :  { %232 = vst [vmem:[#allocation3 + $0x30] sm:$0xcc] %v230_v53  ;;  %v378_v55 = vrot.slane %v375_v54, 4  ;;  %v405_v56 = vpop.permute.xlu1 %404 }
  0xaa   :  { %v407_v58 = vrot.slane %v405_v56, 4 }
  0xab   :  { %v380_v57 = vsel %vm59_vm0, %v378_v55, %v379_v52 }
  0xac   :  { %v381_v59 = vsel %vm144_vm4, %v375_v54, %v380_v57  ;;  %v403_v60 = vpop.permute.xlu0 %402 }
  0xad   :  { %383 = vst [vmem:[#allocation3 + $0x28] sm:$0x33] %v381_v59  ;;  %v406_v61 = vrot.slane %v403_v60, 4  ;;  %v431_v62 = vpop.permute.xlu1 %430 }
  0xae   :  { %v433_v0 = vrot.slane %v431_v62, 4 }
  0xaf   :  { %v408_v63 = vsel %vm59_vm0, %v406_v61, %v407_v58 }
  0xb0   :  { %v409_v1 = vsel %vm173_vm5, %v403_v60, %v408_v63  ;;  %v429_v2 = vpop.permute.xlu0 %428  ;;  %v805_v3 = vld [vmem:[#allocation3 + $0x24] ss:$16 sps:$4 sm:$0xff]   ;;  %v807_v4 = vld [vmem:[#allocation3 + $0x20] ss:$16 sps:$4 sm:$0xff]  }
  0xb1   :  { %411 = vst [vmem:[#allocation3 + $0x28] sm:$0xcc] %v409_v1  ;;  %v432_v5 = vrot.slane %v429_v2, 4  ;;  %572 = vmatprep.subr.bf16.mxu0 %v805_v3  ;;  %v459_v6 = vpop.permute.xlu1 %458 }
  0xb2   :  { %v461_v8 = vrot.slane %v459_v6, 4  ;;  %573 = vmatpush1.bf16.msra.mxu0 %v807_v4 }
  0xb3   :  { %v434_v7 = vsel %vm59_vm0, %v432_v5, %v433_v0 }
  0xb4   :  { %v435_v9 = vsel %vm200_vm6, %v429_v2, %v434_v7  ;;  %v457_v10 = vpop.permute.xlu0 %456 }
  0xb5   :  { %437 = vst [vmem:[#allocation3 + $0x38] sm:$0x33] %v435_v9  ;;  %v460_v11 = vrot.slane %v457_v10, 4  ;;  %v252_v12 = vpop.permute.xlu1 %251 }
  0xb6   :  { %v254_v14 = vrot.slane %v252_v12, 4 }
  0xb7   :  { %v462_v13 = vsel %vm59_vm0, %v460_v11, %v461_v8 }
  0xb8   :  { %v463_v15 = vsel %vm229_vm7, %v457_v10, %v462_v13  ;;  %v250_v16 = vpop.permute.xlu0 %249 }
  0xb9   :  { %465 = vst [vmem:[#allocation3 + $0x38] sm:$0xcc] %v463_v15  ;;  %v253_v17 = vrot.slane %v250_v16, 4  ;;  %v485_v18 = vpop.permute.xlu1 %484 }
  0xba   :  { %v487_v20 = vrot.slane %v485_v18, 4 }
  0xbb   :  { %v255_v19 = vsel %vm59_vm0, %v253_v17, %v254_v14 }
  0xbc   :  { %v257_v21 = vsel %vm256_vm8, %v250_v16, %v255_v19  ;;  %v483_v22 = vpop.permute.xlu0 %482 }
  0xbd   :  { %259 = vst [vmem:[#allocation3 + $0x40] sm:$0x33] %v257_v21  ;;  %v486_v23 = vrot.slane %v483_v22, 4 }
  0xbf   :  { %v488_v24 = vsel %vm59_vm0, %v486_v23, %v487_v20 }
  0xc0   :  { %v489_v25 = vsel %vm256_vm8, %v483_v22, %v488_v24  ;;  %v808_v26 = vld [vmem:[#allocation3 + $0x2c] ss:$16 sps:$4 sm:$0xff]   ;;  %v810_v27 = vld [vmem:[#allocation3 + $0x28] ss:$16 sps:$4 sm:$0xff]  }
  0xc1   :  { %491 = vst [vmem:[#allocation3 + $0x48] sm:$0x33] %v489_v25  ;;  %613 = vmatprep.subr.bf16.mxu1 %v808_v26 }
  0xc2   :  { %614 = vmatpush1.bf16.msra.mxu1 %v810_v27 }
  0xc4   :  { %v501_v28 = vld [vmem:[#allocation3 + $0x40] sm:$0x33] }
  0xc5   :  { %v741_v29 = vcombine.high %v501_v28, %v501_v28  ;;  %v740_v30 = vcombine.low %v501_v28, %v501_v28 }
  0xc7   :  { %744 = vmatprep.subr.msk.bf16.mxu0 %vm557_vm9, %v741_v29  ;;  %v559_v31 = vsel %vm557_vm9, %v740_v30, 0 }
  0xc8   :  { %575 = vmatpush1.bf16.msra.mxu0 %v559_v31  ;;  %v502_v32 = vld [vmem:[#allocation3 + $0x48] sm:$0x33] }
  0xc9   :  { %v743_v34 = vcombine.high %v502_v32, %v502_v32  ;;  %v742_v35 = vcombine.low %v502_v32, %v502_v32 }
  0xca   :  { %v666_v39 = vpop.permute.xlu1 %665 }
  0xcb   :  { %746 = vmatprep.subr.msk.bf16.mxu1 %vm557_vm9, %v743_v34  ;;  %745 = vmatmul.mubr.msk.bf16.vlgmr.msra.gmra.mrb[0].mxu0 %vm553_vm10, %v492_v33  ;;  %v565_v36 = vsel %vm557_vm9, %v742_v35, 0 }
  0xcc   :  { %616 = vmatpush1.bf16.msra.mxu1 %v565_v36 }
  0xcd   :  { %v656_v37 = vpop.permute.xlu0 %655 }
  0xcf   :  { %747 = vmatmul.mubr.msk.bf16.vlgmr.msra.gmra.mrb[0].mxu1 %vm553_vm10, %v492_v33 }
 0x19e   :  { %v604_v38 = vpop.f32.mrb[0].mxu0 }
 0x19f   :  { %v606_v40 = vpop.f32.mrb[1].mxu0  ;;  %v658_v41 = vmul.f32 %v656_v37, %v604_v38 }
 0x1a0   :  { %v608_v42 = vpop.f32.mrb[2].mxu0  ;;  %v659_v43 = vmul.f32 %v656_v37, %v606_v40 }
 0x1a1   :  { %v609_v44 = vpop.f32.mrb[3].mxu0  ;;  %v668_v45 = vadd.f32 %v666_v39, %v658_v41 }
 0x1a2   :  { %v645_v46 = vpop.f32.mrb[0].mxu1  ;;  %v669_v47 = vadd.f32 %v666_v39, %v659_v43 }
 0x1a3   :  { %v660_v48 = vmul.f32 %v656_v37, %v645_v46  ;;  %v647_v49 = vpop.f32.mrb[1].mxu1  ;;  %v672_v50 = vmax.f32 %v668_v45, 0.0 }
 0x1a4   :  { %v661_v51 = vmul.f32 %v656_v37, %v647_v49  ;;  %v673_v52 = vmax.f32 %v669_v47, 0.0  ;;  %v649_v53 = vpop.f32.mrb[2].mxu1 }
 0x1a5   :  { %v670_v54 = vadd.f32 %v666_v39, %v660_v48  ;;  %676 = vst [vmem:[#allocation4] sm:$0xff] %v672_v50  ;;  %v650_v55 = vpop.f32.mrb[3].mxu1 }
 0x1a6   :  { %v671_v56 = vadd.f32 %v666_v39, %v661_v51  ;;  %677 = vst [vmem:[#allocation4 + $0x8] sm:$0xff] %v673_v52 }
 0x1a7   :  { %v674_v57 = vmax.f32 %v670_v54, 0.0 }
 0x1a8   :  { %v675_v58 = vmax.f32 %v671_v56, 0.0 }
 0x1a9   :  { %679 = vst [vmem:[#allocation4 + $0x10] sm:$0xff] %v674_v57 }
 0x1aa   :  { %680 = vst [vmem:[#allocation4 + $0x18] sm:$0xff] %v675_v58 }
 0x1ab   :  { %826 = shalt.err (!%p823_p4)
}
 0x1ac   :  { %s827_s8 = scalar_lea.hbm %s954_s4, 512 }
 0x1ad   :  { %p828_p5 = scmp.ne.s32.totalorder %s954_s4, %s827_s8  ;;  %p831_p6 = scmp.lt.u32.totalorder %s827_s8, %s954_s4 }
 0x1af   :  { %p833_p7 = pnand %p831_p6, %p828_p5 }
 0x1b1   :  { %836 = shalt.err (!%p833_p7)
}
 0x1b2   :  { %s850_s13 = smov 256   ;;  %s851_s14 = smov 16  }
 0x1b3   :  { %692 = dma.vmem_to_hbm [thread:$0]  %s687_s30, 512, %s954_s4, [#allocation5], %s850_s13, %s850_s13, %s851_s14  }
 0x1b4   :  { %837 = dma.done.wait [#allocation5], 512  }
 0x1b5   :  { %838 = vsyncadd [#allocation5], 4294966784 }
 0x1b6   :  { %696 = vsyncpa [#allocation5], 1 }

</bundles_post_ra>
